<compile_context>
chip_gen: v6e
topology: v6e:2x2x1
jax: 0.10.0
libtpu: 0.0.40
codegen_flags: <defaults>
</compile_context>

<pallas_src>
import math

import jax
import jax.numpy as jnp
from jax.experimental import pallas as pl
from jax.experimental.pallas import tpu as pltpu

_SQRT_2_OVER_PI = math.sqrt(2.0 / math.pi)


def _round_up(x, m):
    return ((x + m - 1) // m) * m


def _ffn_kernel(x_ref, w1_ref, b1_ref, w2_ref, b2_ref, o_ref, acc_ref):
    k = pl.program_id(1)

    @pl.when(k == 0)
    def _():
        acc_ref[...] = jnp.zeros_like(acc_ref)

    # lin1 on this hidden block: (TM, in_dim) @ (in_dim, TH) -> f32 on the MXU.
    h = jnp.dot(x_ref[...], w1_ref[...], preferred_element_type=jnp.float32)
    h = h + b1_ref[...].astype(jnp.float32)

    # gelu (tanh approximation, matches the reference python gelu()).
    # tanh lowers to the EUP slot; polynomial kept to few temporaries.
    h3 = h * h * h
    h = 0.5 * h * (1.0 + jnp.tanh(_SQRT_2_OVER_PI * (h + 0.044715 * h3)))

    # partial lin2: accumulate (TM, out_dim) in f32 across hidden blocks.
    acc_ref[...] += jnp.dot(h.astype(w2_ref.dtype), w2_ref[...],
                            preferred_element_type=jnp.float32)

    @pl.when(k == pl.num_programs(1) - 1)
    def _():
        out = acc_ref[...] + b2_ref[...].astype(jnp.float32)
        # dropout: module evaluated in inference mode (training=False) -> identity.
        # TODO(synk): add pltpu.prng_seed/prng_random_bits dropout mask for training mode.
        o_ref[...] = out.astype(o_ref.dtype)


def transformer_ffn(x, w1, b1, w2, b2, *, row_tile=256, hidden_tile=512):
    """x: (B, S, in_dim); w1: (in_dim, H); w2: (H, out_dim). Returns (B, S, out_dim)."""
    B, S, in_dim = x.shape
    H = w1.shape[1]
    out_dim = w2.shape[1]
    dtype = x.dtype
    rows = B * S

    # ---- derive TPU-friendly tile sizes ------------------------------------
    row_tile = _round_up(min(row_tile, rows), 8)
    if H <= hidden_tile:
        hidden_tile = H                      # single K block: full-extent is legal
    else:
        hidden_tile = _round_up(hidden_tile, 128)

    rows_p = _round_up(rows, row_tile)
    H_p = _round_up(H, hidden_tile)
    out_p = _round_up(out_dim, 128)          # lane-dense output stores

    # ---- zero-pad operands (exact: gelu(0)=0; padded cols sliced off) ------
    x2d = x.reshape(rows, in_dim)
    if rows_p != rows:
        x2d = jnp.pad(x2d, ((0, rows_p - rows), (0, 0)))
    w1p = jnp.pad(w1, ((0, 0), (0, H_p - H))) if H_p != H else w1
    b1p = jnp.pad(b1, ((0, H_p - H),)) if H_p != H else b1
    if H_p != H or out_p != out_dim:
        w2p = jnp.pad(w2, ((0, H_p - H), (0, out_p - out_dim)))
    else:
        w2p = w2
    b2p = jnp.pad(b2, ((0, out_p - out_dim),)) if out_p != out_dim else b2
    b1p = b1p.reshape(1, H_p)
    b2p = b2p.reshape(1, out_p)

    grid = (rows_p // row_tile, H_p // hidden_tile)

    # ---- VMEM budget (double-buffered inputs/outputs + f32 accumulator) ----
    esz = jnp.dtype(dtype).itemsize
    vmem_needed = (
        2 * row_tile * in_dim * esz          # x tile
        + 2 * in_dim * hidden_tile * esz     # W1 slab
        + 2 * hidden_tile * esz              # b1 slab
        + 2 * hidden_tile * out_p * esz      # W2 slab
        + 2 * out_p * esz                    # b2
        + 2 * row_tile * out_p * esz         # output tile
        + row_tile * out_p * 4)              # f32 accumulator scratch
    vmem_limit = None
    if vmem_needed > (30 << 20):
        try:
            phys = pltpu.get_tpu_info().vmem_capacity_bytes
        except Exception:
            phys = 64 << 20                  # conservative: v7x per-core VMEM
        vmem_limit = min(max(vmem_needed + (8 << 20), 32 << 20), phys * 7 // 8)

    cost = pl.CostEstimate(
        flops=2 * rows * (in_dim * H + H * out_dim),
        transcendentals=rows * H,
        bytes_accessed=int((x2d.size + w1.size + b1.size + w2.size + b2.size
                            + rows * out_dim) * esz),
    )

    out2d = pl.pallas_call(
        _ffn_kernel,
        out_shape=jax.ShapeDtypeStruct((rows_p, out_p), dtype),
        grid_spec=pltpu.PrefetchScalarGridSpec(
            num_scalar_prefetch=0,
            grid=grid,
            in_specs=[
                pl.BlockSpec((row_tile, in_dim), lambda i, k: (i, 0)),   # x row tile
                pl.BlockSpec((in_dim, hidden_tile), lambda i, k: (0, k)),  # W1 slab
                pl.BlockSpec((1, hidden_tile), lambda i, k: (0, k)),       # b1 slab
                pl.BlockSpec((hidden_tile, out_p), lambda i, k: (k, 0)),   # W2 slab
                pl.BlockSpec((1, out_p), lambda i, k: (0, 0)),             # b2
            ],
            out_specs=pl.BlockSpec((row_tile, out_p), lambda i, k: (i, 0)),
            scratch_shapes=[pltpu.VMEM((row_tile, out_p), jnp.float32)],
        ),
        compiler_params=pltpu.CompilerParams(
            dimension_semantics=("parallel", "arbitrary"),
            vmem_limit_bytes=vmem_limit),
        cost_estimate=cost,
    )(x2d, w1p, b1p, w2p, b2p)

    return out2d[:rows, :out_dim].reshape(B, S, out_dim)


def _reference_ffn(x, w1, b1, w2, b2):
    h = jnp.einsum("bsi,ih->bsh", x, w1) + b1
    c = math.sqrt(2.0 / math.pi)
    h = 0.5 * h * (1.0 + jnp.tanh(c * (h + 0.044715 * h ** 3)))
    return jnp.einsum("bsh,ho->bso", h, w2) + b2


if __name__ == "__main__":
    key = jax.random.PRNGKey(0)

    # Case 1: tiny shapes straight from the module (single hidden block).
    # Case 2: hidden dim split into two K blocks (exercises the accumulator path).
    cases = [
        dict(B=2, S=8, in_dim=32, H=64, out_dim=32, hidden_tile=512),
        dict(B=2, S=8, in_dim=64, H=256, out_dim=64, hidden_tile=128),
    ]

    for ci, c in enumerate(cases):
        key, kx, k1, kb1, k2, kb2 = jax.random.split(key, 6)
        x = jax.random.normal(kx, (c["B"], c["S"], c["in_dim"]), dtype=jnp.float32)
        w1 = jax.random.normal(k1, (c["in_dim"], c["H"]), dtype=jnp.float32) / math.sqrt(c["in_dim"])
        b1 = jax.random.normal(kb1, (c["H"],), dtype=jnp.float32) * 0.02
        w2 = jax.random.normal(k2, (c["H"], c["out_dim"]), dtype=jnp.float32) / math.sqrt(c["H"])
        b2 = jax.random.normal(kb2, (c["out_dim"],), dtype=jnp.float32) * 0.02

        out = transformer_ffn(x, w1, b1, w2, b2,
                              row_tile=256, hidden_tile=c["hidden_tile"])
        out = jax.block_until_ready(out)

        ref = _reference_ffn(x, w1, b1, w2, b2)
        assert out.shape == ref.shape, f"shape mismatch in case {ci}"
        assert jnp.allclose(out, ref, atol=1e-4, rtol=1e-4), f"mismatch vs reference in case {ci}"

    print("KERNEL_OK")
</pallas_src>

<mosaic_0001>
module attributes {stable_mosaic.version = 11 : i64} {
  func.func @_ffn_kernel(%arg0: i32, %arg1: i32, %arg2: memref<16x32xf32, #tpu.memory_space<vmem>>, %arg3: memref<32x64xf32, #tpu.memory_space<vmem>>, %arg4: memref<1x64xf32, #tpu.memory_space<vmem>>, %arg5: memref<64x128xf32, #tpu.memory_space<vmem>>, %arg6: memref<1x128xf32, #tpu.memory_space<vmem>>, %arg7: memref<16x128xf32, #tpu.memory_space<vmem>>, %arg8: memref<16x128xf32, #tpu.memory_space<vmem>>) attributes {dimension_semantics = [#tpu.dimension_semantics<parallel>, #tpu.dimension_semantics<arbitrary>], iteration_bounds = array<i64: 1, 1>, scalar_prefetch = 0 : i64, scratch_operands = 1 : i64, tpu.core_type = #tpu.core_type<tc>, window_params = [{transform_indices = @transform_0, window_bounds = array<i64: 16, 32>}, {transform_indices = @transform_1, window_bounds = array<i64: 32, 64>}, {transform_indices = @transform_2, window_bounds = array<i64: 1, 64>}, {transform_indices = @transform_3, window_bounds = array<i64: 64, 128>}, {pipeline_mode = #tpu.pipeline_mode<synchronous>, transform_indices = @transform_4, window_bounds = array<i64: 1, 128>}, {transform_indices = @transform_5, window_bounds = array<i64: 16, 128>}]} {
    %c0_i32 = arith.constant 0 : i32
    %0 = arith.cmpi eq, %arg1, %c0_i32 : i32
    %1 = arith.extui %0 : i1 to i32
    %c0_i32_0 = arith.constant 0 : i32
    %2 = arith.cmpi ne, %1, %c0_i32_0 : i32
    scf.if %2 {
      %cst_19 = arith.constant 0.000000e+00 : f32
      %30 = vector.broadcast %cst_19 : f32 to vector<16x128xf32>
      %c0_20 = arith.constant 0 : index
      %c0_21 = arith.constant 0 : index
      %31 = vector.load %arg8[%c0_20, %c0_21] : memref<16x128xf32, #tpu.memory_space<vmem>>, vector<16x128xf32>
      tpu.vector_store %arg8[%c0_20, %c0_21], %30 {strides = array<i32>} : memref<16x128xf32, #tpu.memory_space<vmem>>, vector<16x128xf32>,
    } else {
    }
    %c0 = arith.constant 0 : index
    %c0_1 = arith.constant 0 : index
    %3 = vector.load %arg2[%c0, %c0_1] : memref<16x32xf32, #tpu.memory_space<vmem>>, vector<16x32xf32>
    %c0_2 = arith.constant 0 : index
    %c0_3 = arith.constant 0 : index
    %4 = vector.load %arg3[%c0_2, %c0_3] : memref<32x64xf32, #tpu.memory_space<vmem>>, vector<32x64xf32>
    %cst = arith.constant dense<0.000000e+00> : vector<16x64xf32>
    %5 = tpu.matmul %3, %4, %cst {dimension_numbers = #tpu.dot_dimension_numbers<[1], [0], [0], [1], [0, 0, 1, 1], [], []>} : vector<16x32xf32>, vector<32x64xf32>, vector<16x64xf32> -> vector<16x64xf32>
    %c0_4 = arith.constant 0 : index
    %c0_5 = arith.constant 0 : index
    %6 = vector.load %arg4[%c0_4, %c0_5] : memref<1x64xf32, #tpu.memory_space<vmem>>, vector<1x64xf32>
    %7 = vector.broadcast %6 : vector<1x64xf32> to vector<16x64xf32>
    %8 = arith.addf %5, %7 : vector<16x64xf32>
    %9 = arith.mulf %8, %8 : vector<16x64xf32>
    %10 = arith.mulf %9, %8 : vector<16x64xf32>
    %cst_6 = arith.constant 5.000000e-01 : f32
    %11 = vector.broadcast %cst_6 : f32 to vector<16x64xf32>
    %12 = arith.mulf %11, %8 : vector<16x64xf32>
    %cst_7 = arith.constant 4.471500e-02 : f32
    %13 = vector.broadcast %cst_7 : f32 to vector<16x64xf32>
    %14 = arith.mulf %13, %10 : vector<16x64xf32>
    %15 = arith.addf %8, %14 : vector<16x64xf32>
    %cst_8 = arith.constant 0.797884583 : f32
    %16 = vector.broadcast %cst_8 : f32 to vector<16x64xf32>
    %17 = arith.mulf %16, %15 : vector<16x64xf32>
    %18 = math.tanh %17 : vector<16x64xf32>
    %cst_9 = arith.constant 1.000000e+00 : f32
    %19 = vector.broadcast %cst_9 : f32 to vector<16x64xf32>
    %20 = arith.addf %19, %18 : vector<16x64xf32>
    %21 = arith.mulf %12, %20 : vector<16x64xf32>
    %c0_10 = arith.constant 0 : index
    %c0_11 = arith.constant 0 : index
    %22 = vector.load %arg8[%c0_10, %c0_11] : memref<16x128xf32, #tpu.memory_space<vmem>>, vector<16x128xf32>
    %c0_12 = arith.constant 0 : index
    %c0_13 = arith.constant 0 : index
    %23 = vector.load %arg5[%c0_12, %c0_13] : memref<64x128xf32, #tpu.memory_space<vmem>>, vector<64x128xf32>
    %cst_14 = arith.constant dense<0.000000e+00> : vector<16x128xf32>
    %24 = tpu.matmul %21, %23, %cst_14 {dimension_numbers = #tpu.dot_dimension_numbers<[1], [0], [0], [1], [0, 0, 1, 1], [], []>} : vector<16x64xf32>, vector<64x128xf32>, vector<16x128xf32> -> vector<16x128xf32>
    %25 = arith.addf %22, %24 : vector<16x128xf32>
    %c0_15 = arith.constant 0 : index
    %c0_16 = arith.constant 0 : index
    %26 = vector.load %arg8[%c0_15, %c0_16] : memref<16x128xf32, #tpu.memory_space<vmem>>, vector<16x128xf32>
    tpu.vector_store %arg8[%c0_15, %c0_16], %25 {strides = array<i32>} : memref<16x128xf32, #tpu.memory_space<vmem>>, vector<16x128xf32>,
    %c0_i32_17 = arith.constant 0 : i32
    %27 = arith.cmpi eq, %arg1, %c0_i32_17 : i32
    %28 = arith.extui %27 : i1 to i32
    %c0_i32_18 = arith.constant 0 : i32
    %29 = arith.cmpi ne, %28, %c0_i32_18 : i32
    scf.if %29 {
      %c0_19 = arith.constant 0 : index
      %c0_20 = arith.constant 0 : index
      %30 = vector.load %arg8[%c0_19, %c0_20] : memref<16x128xf32, #tpu.memory_space<vmem>>, vector<16x128xf32>
      %c0_21 = arith.constant 0 : index
      %c0_22 = arith.constant 0 : index
      %31 = vector.load %arg6[%c0_21, %c0_22] : memref<1x128xf32, #tpu.memory_space<vmem>>, vector<1x128xf32>
      %32 = vector.broadcast %31 : vector<1x128xf32> to vector<16x128xf32>
      %33 = arith.addf %30, %32 : vector<16x128xf32>
      %c0_23 = arith.constant 0 : index
      %c0_24 = arith.constant 0 : index
      %34 = vector.load %arg7[%c0_23, %c0_24] : memref<16x128xf32, #tpu.memory_space<vmem>>, vector<16x128xf32>
      tpu.vector_store %arg7[%c0_23, %c0_24], %33 {strides = array<i32>} : memref<16x128xf32, #tpu.memory_space<vmem>>, vector<16x128xf32>,
    } else {
    }
    return
  }
  func.func @transform_0(%arg0: i32, %arg1: i32) -> (i32, i32) {
    %c0_i32 = arith.constant 0 : i32
    %c0_i32_0 = arith.constant 0 : i32
    return %arg0, %c0_i32 : i32, i32
  }
  func.func @transform_1(%arg0: i32, %arg1: i32) -> (i32, i32) {
    %c0_i32 = arith.constant 0 : i32
    %c0_i32_0 = arith.constant 0 : i32
    return %c0_i32, %arg1 : i32, i32
  }
  func.func @transform_2(%arg0: i32, %arg1: i32) -> (i32, i32) {
    %c0_i32 = arith.constant 0 : i32
    %c0_i32_0 = arith.constant 0 : i32
    return %c0_i32, %arg1 : i32, i32
  }
  func.func @transform_3(%arg0: i32, %arg1: i32) -> (i32, i32) {
    %c0_i32 = arith.constant 0 : i32
    %c0_i32_0 = arith.constant 0 : i32
    return %arg1, %c0_i32 : i32, i32
  }
  func.func @transform_4(%arg0: i32, %arg1: i32) -> (i32, i32) {
    %c0_i32 = arith.constant 0 : i32
    %c0_i32_0 = arith.constant 0 : i32
    %c0_i32_1 = arith.constant 0 : i32
    return %c0_i32, %c0_i32_0 : i32, i32
  }
  func.func @transform_5(%arg0: i32, %arg1: i32) -> (i32, i32) {
    %c0_i32 = arith.constant 0 : i32
    %c0_i32_0 = arith.constant 0 : i32
    return %arg0, %c0_i32 : i32, i32
  }
}

</mosaic_0001>

<bundles_post_ra>
// kernel: tpu_custom_call.1
= control target key start
LH: loop header
LB: loop body
LE: loop exit
PB: predicated region body
PF: predicated region fallthrough
CT: control target
= control target key end

     0   :  { %10 = vsyncpa [#allocation4], 0  ;;  %s527_s0 = inlined_call_operand.hbm [shape: f32[16,32], index: 0, kind: input, shape index: {}]   ;;  %s528_s1 = inlined_call_operand.hbm [shape: f32[32,64], index: 1, kind: input, shape index: {}]   ;;  %s529_s2 = inlined_call_operand.vmem [shape: f32[1,64], index: 2, kind: input, shape index: {}]   ;;  %s530_s3 = inlined_call_operand.hbm [shape: f32[64,128], index: 3, kind: input, shape index: {}]   ;;  %s531_s4 = inlined_call_operand.vmem [shape: f32[1,128], index: 4, kind: input, shape index: {}]   ;;  %s532_s5 = inlined_call_operand.hbm [shape: f32[16,128], index: 5, kind: output, shape index: {}]  }
   0x1   :  { %11 = vsyncpa [#allocation7], 0 }
   0x2   :  { %12 = vsyncpa [#allocation5], 0  ;;  %s459_s18 = smov [#allocation6]   ;;  %s460_s20 = smov [#allocation3]  }
   0x3   :  { %s30_s19 = sshll.u32 %s459_s18, 4  ;;  %s18_s21 = sshll.u32 %s460_s20, 4  ;;  %s31_s19 = int_to_ptr.vmem [resolvable:$true] %s30_s19  ;;  %s19_s21 = int_to_ptr.vmem [resolvable:$true] %s18_s21 }
   0x4   :  { %s381_s22 = scalar_lea.vmem %s31_s19, 512  ;;  %p386_p1 = scmp.lt.s32.totalorder %s31_s19, %s31_s19 }
   0x5   :  { %p382_p0 = scmp.ne.s32.totalorder %s31_s19, %s381_s22  ;;  %p387_p2 = scmp.lt.s32.totalorder %s381_s22, %s381_s22 }
   0x7   :  { %p388_p3 = por %p387_p2, %p386_p1 }
   0x9   :  { %p389_p4 = pnand %p388_p3, %p382_p0 }
   0xb   :  { %392 = shalt.err (!%p389_p4)
}
   0xc   :  { %s461_s23 = smov 128   ;;  %s462_s24 = smov 8  }
   0xd   :  { %36 = dma.hbm_to_vmem [thread:$0]  %s528_s1, 512, %s31_s19, [#allocation7], %s461_s23, %s461_s23, %s462_s24  }
   0xe   :  { %s401_s27 = scalar_lea.vmem %s19_s21, 256  ;;  %p406_p6 = scmp.lt.s32.totalorder %s19_s21, %s19_s21 }
   0xf   :  { %p402_p5 = scmp.ne.s32.totalorder %s19_s21, %s401_s27  ;;  %p407_p7 = scmp.lt.s32.totalorder %s401_s27, %s401_s27 }
  0x11   :  { %p408_p8 = por %p407_p7, %p406_p6 }
  0x13   :  { %p409_p9 = pnand %p408_p8, %p402_p5 }
  0x15   :  { %412 = shalt.err (!%p409_p9)
}
  0x16   :  { %24 = dma.hbm_to_vmem [thread:$0]  %s527_s0, 256, %s19_s21, [#allocation4], %s461_s23, %s461_s23, %s462_s24  }
  0x17   :  { %s463_s30 = smov [#allocation8]  }
  0x18   :  { %s44_s6 = sshll.u32 %s463_s30, 4  ;;  %s45_s6 = int_to_ptr.vmem [resolvable:$true] %s44_s6 }
  0x19   :  { %s421_s7 = scalar_lea.vmem %s45_s6, 1024  ;;  %p426_p11 = scmp.lt.s32.totalorder %s45_s6, %s45_s6 }
  0x1a   :  { %p422_p10 = scmp.ne.s32.totalorder %s45_s6, %s421_s7  ;;  %p427_p12 = scmp.lt.s32.totalorder %s421_s7, %s421_s7 }
  0x1c   :  { %p428_p13 = por %p427_p12, %p426_p11 }
  0x1e   :  { %p429_p0 = pnand %p428_p13, %p422_p10 }
  0x20   :  { %432 = shalt.err (!%p429_p0)
}
  0x21   :  { %50 = dma.hbm_to_vmem [thread:$0]  %s530_s3, 1024, %s45_s6, [#allocation7], %s461_s23, %s461_s23, %s462_s24  }
  0x22   :  { %453 = dma.done.wait [#allocation4], 256  }
  0x23   :  { %454 = vsyncadd [#allocation4], 4294967040 }
  0x24   :  { %455 = dma.done.wait [#allocation7], 1536  }
  0x25   :  { %456 = vsyncadd [#allocation7], 4294965760  ;;  %vm81_vm0 = vcmask 261120   ;;  %v73_v0 = vld [vmem:[#allocation6 + $0x18] sm:$0xff]  ;;  %v72_v1 = vld [vmem:[#allocation6 + $0x10] sm:$0xff]  ;;  %vm191_vm1 = vcmask 523264  }
  0x26   :  { %333 = vmatprep.subr.mxu0 %v73_v0  ;;  %v68_v2 = vld [vmem:[#allocation3] sm:$0xff]  ;;  %v71_v3 = vld [vmem:[#allocation6 + $0x8] sm:$0xff]  ;;  %v70_v4 = vld [vmem:[#allocation6] sm:$0xff]  ;;  %s464_s10 = smov [#allocation9]  }
  0x27   :  { %334 = vmatpush3.msra.mxu0 %v73_v0  ;;  %341 = vmatprep.mubr.msk.f32.mxu0 %vm81_vm0, %v68_v2  ;;  %v69_v5 = vld [vmem:[#allocation3 + $0x8] sm:$0xff]  ;;  %v189_v7 = vld [vmem:[#allocation8 + $0x30] sm:$0xff]  ;;  %v188_v8 = vld [vmem:[#allocation8 + $0x28] sm:$0xff]  ;;  %s298_s11 = sshll.u32 %s464_s10, 4  ;;  %s299_s11 = int_to_ptr.vmem [resolvable:$true] %s298_s11 }
  0x28   :  { %335 = vmatprep.subr.mxu0 %v72_v1  ;;  %v190_v6 = vld [vmem:[#allocation8 + $0x38] sm:$0xff]  ;;  %v187_v9 = vld [vmem:[#allocation8 + $0x20] sm:$0xff]  ;;  %v185_v11 = vld [vmem:[#allocation8 + $0x10] sm:$0xff]  ;;  %s433_s12 = scalar_lea.vmem %s299_s11, 256  ;;  %p438_p2 = scmp.lt.s32.totalorder %s299_s11, %s299_s11 }
  0x29   :  { %336 = vmatpush3.msra.mxu0 %v72_v1  ;;  %344 = vmatprep.subr.mxu1 %v190_v6  ;;  %v186_v10 = vld [vmem:[#allocation8 + $0x18] sm:$0xff]  ;;  %v184_v12 = vld [vmem:[#allocation8 + $0x8] sm:$0xff]  ;;  %v183_v13 = vld [vmem:[#allocation8] sm:$0xff]  ;;  %p434_p1 = scmp.ne.s32.totalorder %s299_s11, %s433_s12  ;;  %p439_p3 = scmp.lt.s32.totalorder %s433_s12, %s433_s12 }
  0x2a   :  { %337 = vmatprep.subr.mxu0 %v71_v3  ;;  %345 = vmatpush3.msra.mxu1 %v190_v6  ;;  %v311_v14 = vld [vmem:[%s529_s2] ss:$0 sm:$0xff] }
  0x2b   :  { %338 = vmatpush3.msra.mxu0 %v71_v3  ;;  %346 = vmatprep.subr.mxu1 %v189_v7  ;;  %v316_v37 = vld [vmem:[%s531_s4] ss:$0 sm:$0xff]  ;;  %p440_p4 = por %p439_p3, %p438_p2 }
  0x2c   :  { %339 = vmatprep.subr.mxu0 %v70_v4  ;;  %347 = vmatpush3.msra.mxu1 %v189_v7 }
  0x2d   :  { %340 = vmatpush3.msra.mxu0 %v70_v4  ;;  %348 = vmatprep.subr.mxu1 %v188_v8  ;;  %p441_p5 = pnand %p440_p4, %p434_p1 }
  0x2e   :  { %342 = vmatmul.mubr.msk.f32.vlgmr.msra.gmra.mxu0 %vm81_vm0, %v69_v5  ;;  %349 = vmatpush3.msra.mxu1 %v188_v8 }
  0x2f   :  { %350 = vmatprep.subr.mxu1 %v187_v9 }
  0x30   :  { %351 = vmatpush3.msra.mxu1 %v187_v9 }
  0x31   :  { %352 = vmatprep.subr.mxu1 %v186_v10 }
  0x32   :  { %353 = vmatpush3.msra.mxu1 %v186_v10 }
  0x33   :  { %354 = vmatprep.subr.mxu1 %v185_v11 }
  0x34   :  { %355 = vmatpush3.msra.mxu1 %v185_v11 }
  0x35   :  { %356 = vmatprep.subr.mxu1 %v184_v12 }
  0x36   :  { %357 = vmatpush3.msra.mxu1 %v184_v12 }
  0x37   :  { %358 = vmatprep.subr.mxu1 %v183_v13 }
  0x38   :  { %359 = vmatpush3.msra.mxu1 %v183_v13 }
  0xee   :  { %v343_v15 = vpop.f32.mrf.mxu0 }
  0xef   :  { %v160_v16 = vadd.f32 %v343_v15, %v311_v14 }
  0xf0   :  { %v154_v17 = vpop.f32.mrf.mxu0 }
  0xf1   :  { %v164_v18 = vmul.f32 %v160_v16, %v160_v16  ;;  %v155_v19 = vadd.f32 %v311_v14, %v154_v17  ;;  %v168_v34 = vmul.f32 0.5, %v160_v16 }
  0xf3   :  { %v166_v20 = vmul.f32 %v164_v18, %v160_v16  ;;  %v163_v21 = vmul.f32 %v155_v19, %v155_v19  ;;  %v167_v32 = vmul.f32 0.5, %v155_v19 }
  0xf5   :  { %v170_v22 = vmul.f32 0.044715, %v166_v20  ;;  %v165_v23 = vmul.f32 %v163_v21, %v155_v19 }
  0xf7   :  { %v172_v24 = vadd.f32 %v170_v22, %v160_v16  ;;  %v169_v25 = vmul.f32 0.044715, %v165_v23 }
  0xf9   :  { %v174_v26 = vmul.f32 0.7978846, %v172_v24  ;;  %v171_v27 = vadd.f32 %v169_v25, %v155_v19 }
  0xfb   :  { %369 = vtanh.f32 %v174_v26  ;;  %v173_v28 = vmul.f32 0.7978846, %v171_v27 }
  0xfd   :  { %371 = vtanh.f32 %v173_v28 }
 0x108   :  { %v370_v29 = vpop.eup %369 }
 0x109   :  { %v178_v31 = vadd.f32 1.0, %v370_v29 }
 0x10a   :  { %v372_v30 = vpop.eup %371 }
 0x10b   :  { %v177_v33 = vadd.f32 1.0, %v372_v30  ;;  %v180_v36 = vmul.f32 %v178_v31, %v168_v34 }
 0x10d   :  { %v179_v35 = vmul.f32 %v177_v33, %v167_v32 }
 0x10f   :  { %360 = vmatprep.mubr.msk.f32.mxu1 %vm191_vm1, %v179_v35 }
 0x110   :  { %361 = vmatmul.mubr.msk.f32.vlgmr.msra.gmra.mxu1 %vm191_vm1, %v180_v36 }
 0x1d0   :  { %v362_v38 = vpop.f32.mrf.mxu1 }
 0x1d1   :  { %v290_v39 = vadd.f32 %v362_v38, %v316_v37 }
 0x1d2   :  { %v264_v40 = vpop.f32.mrf.mxu1 }
 0x1d3   :  { %292 = vst [vmem:[#allocation9 + $0x8] sm:$0xff] %v290_v39  ;;  %v289_v41 = vadd.f32 %v316_v37, %v264_v40 }
 0x1d5   :  { %291 = vst [vmem:[#allocation9] sm:$0xff] %v289_v41 }
 0x1d6   :  { %444 = shalt.err (!%p441_p5)
}
 0x1d7   :  { %304 = dma.vmem_to_hbm [thread:$0]  %s299_s11, 256, %s532_s5, [#allocation5], %s461_s23, %s461_s23, %s462_s24  }
 0x1d8   :  { %457 = dma.done.wait [#allocation5], 256  }
 0x1d9   :  { %458 = vsyncadd [#allocation5], 4294967040 }
 0x1da   :  { %308 = vsyncpa [#allocation4], 1 }
 0x1db   :  { %309 = vsyncpa [#allocation7], 1 }
 0x1dc   :  { %310 = vsyncpa [#allocation5], 1 }

</bundles_post_ra>
